<compile_context>
chip_gen: v7x
topology: tpu7x:2x2x1
jax: 0.10.0
libtpu: 0.0.40
codegen_flags: <defaults>
</compile_context>

<pallas_src>
import functools

import jax
import jax.numpy as jnp
import numpy as np
from jax.experimental import pallas as pl
from jax.experimental.pallas import tpu as pltpu

_BN_EPS = 1e-5


# ----------------------------------------------------------------------------
# Pallas kernel: one batch element per grid step.
# ----------------------------------------------------------------------------
def _lgca_kernel(x_ref, wl1_ref, bl1_ref, wl2_ref, bl2_ref,
                 wg1_ref, bg1_ref, wg2_ref, bg2_ref, o_ref, *, hw):
    x = x_ref[...]                                                 # (HW, C) f32

    # ---- Local channel attention (per spatial position) ---------------------
    h = jnp.dot(x, wl1_ref[...], preferred_element_type=jnp.float32)
    h = jnp.maximum(h + bl1_ref[...], 0.0)                         # (HW, Cr)
    lca = jnp.dot(h, wl2_ref[...], preferred_element_type=jnp.float32)
    lca_w = jax.nn.sigmoid(lca + bl2_ref[...])                     # (HW, C)

    # ---- Global channel attention (global average pool) ---------------------
    gap = jnp.sum(x, axis=0, keepdims=True) * (1.0 / hw)           # (1, C)
    hg = jnp.dot(gap, wg1_ref[...], preferred_element_type=jnp.float32)
    hg = jnp.maximum(hg + bg1_ref[...], 0.0)                       # (1, Cr)
    gca = jnp.dot(hg, wg2_ref[...], preferred_element_type=jnp.float32)
    gca_w = jax.nn.sigmoid(gca + bg2_ref[...])                     # (1, C)

    # ---- combine + residual --------------------------------------------------
    o_ref[...] = (lca_w + gca_w + x).astype(o_ref.dtype)


# ----------------------------------------------------------------------------
# Wrapper: BN folding, layout plumbing, pallas_call
# ----------------------------------------------------------------------------
def _fold_conv_bn(w, b, bn):
    """Fold Conv1x1(+bias) followed by inference-mode BatchNorm.

    w  : (out, in, 1, 1)   b : (out,)   bn : (gamma, beta, mean, var)
    Returns (in, out) matmul weight and (1, out) bias.
    """
    gamma, beta, mean, var = bn
    s = gamma / jnp.sqrt(var + _BN_EPS)                            # (out,)
    w_f = (w[:, :, 0, 0] * s[:, None]).T                           # (in, out)
    b_f = b * s + beta - mean * s                                  # (out,)
    return w_f.astype(jnp.float32), b_f[None, :].astype(jnp.float32)


def lgca_forward(x, params):
    B, C, H, W = x.shape
    Cr = params['la_w1'].shape[0]
    HW = H * W

    # glue: NCHW -> channels-last, flattened-spatial (single input copy)
    x_hw = jnp.transpose(x, (0, 2, 3, 1)).reshape(B, HW, C)

    # glue: fold BN into 1x1 conv weights/biases
    wl1, bl1 = _fold_conv_bn(params['la_w1'], params['la_b1'], params['la_bn1'])
    wl2, bl2 = _fold_conv_bn(params['la_w2'], params['la_b2'], params['la_bn2'])
    wg1, bg1 = _fold_conv_bn(params['ga_w1'], params['ga_b1'], params['ga_bn1'])
    wg2, bg2 = _fold_conv_bn(params['ga_w2'], params['ga_b2'], params['ga_bn2'])

    kernel = functools.partial(_lgca_kernel, hw=HW)

    out_hw = pl.pallas_call(
        kernel,
        out_shape=jax.ShapeDtypeStruct((B, HW, C), jnp.float32),
        grid_spec=pltpu.PrefetchScalarGridSpec(
            num_scalar_prefetch=0,
            grid=(B,),
            in_specs=[
                pl.BlockSpec((None, HW, C), lambda b: (b, 0, 0)),   # x (residual + conv input)
                pl.BlockSpec((C, Cr), lambda b: (0, 0)),            # LA conv1 (folded BN)
                pl.BlockSpec((1, Cr), lambda b: (0, 0)),
                pl.BlockSpec((Cr, C), lambda b: (0, 0)),            # LA conv2 (folded BN)
                pl.BlockSpec((1, C), lambda b: (0, 0)),
                pl.BlockSpec((C, Cr), lambda b: (0, 0)),            # GA conv1 (folded BN)
                pl.BlockSpec((1, Cr), lambda b: (0, 0)),
                pl.BlockSpec((Cr, C), lambda b: (0, 0)),            # GA conv2 (folded BN)
                pl.BlockSpec((1, C), lambda b: (0, 0)),
            ],
            out_specs=pl.BlockSpec((None, HW, C), lambda b: (b, 0, 0)),
        ),
        compiler_params=pltpu.CompilerParams(
            dimension_semantics=("parallel",)),
    )(x_hw, wl1, bl1, wl2, bl2, wg1, bg1, wg2, bg2)

    return out_hw.reshape(B, H, W, C).transpose(0, 3, 1, 2)        # NCHW


# ----------------------------------------------------------------------------
# Deterministic parameter init (shapes match the PyTorch module __init__)
# ----------------------------------------------------------------------------
def init_params(key, channels, r):
    Cr = channels // r
    ks = jax.random.split(key, 12)

    def w(k, shape, scale=0.1):
        return (scale * jax.random.normal(k, shape)).astype(jnp.float32)

    def bn(k, n):
        k1, k2, k3, k4 = jax.random.split(k, 4)
        gamma = (1.0 + 0.1 * jax.random.normal(k1, (n,))).astype(jnp.float32)
        beta = (0.1 * jax.random.normal(k2, (n,))).astype(jnp.float32)
        mean = (0.1 * jax.random.normal(k3, (n,))).astype(jnp.float32)
        var = jax.random.uniform(k4, (n,), minval=0.5, maxval=1.5,
                                 dtype=jnp.float32)
        return (gamma, beta, mean, var)

    return dict(
        la_w1=w(ks[0], (Cr, channels, 1, 1)), la_b1=w(ks[1], (Cr,)),
        la_bn1=bn(ks[2], Cr),
        la_w2=w(ks[3], (channels, Cr, 1, 1)), la_b2=w(ks[4], (channels,)),
        la_bn2=bn(ks[5], channels),
        ga_w1=w(ks[6], (Cr, channels, 1, 1)), ga_b1=w(ks[7], (Cr,)),
        ga_bn1=bn(ks[8], Cr),
        ga_w2=w(ks[9], (channels, Cr, 1, 1)), ga_b2=w(ks[10], (channels,)),
        ga_bn2=bn(ks[11], channels),
    )


# ----------------------------------------------------------------------------
# Pure-JAX reference (mirrors the PyTorch forward, BN in eval mode)
# ----------------------------------------------------------------------------
def lgca_reference(x, params):
    def conv1x1(y, w, b):
        return (jnp.einsum('bchw,oc->bohw', y, w[:, :, 0, 0])
                + b[None, :, None, None])

    def bn(y, p):
        gamma, beta, mean, var = p
        inv = gamma / jnp.sqrt(var + _BN_EPS)
        return ((y - mean[None, :, None, None]) * inv[None, :, None, None]
                + beta[None, :, None, None])

    # GA path
    gap = jnp.mean(x, axis=(2, 3), keepdims=True)
    ga = bn(conv1x1(gap, params['ga_w1'], params['ga_b1']), params['ga_bn1'])
    ga = jax.nn.relu(ga)
    ga = bn(conv1x1(ga, params['ga_w2'], params['ga_b2']), params['ga_bn2'])
    gca_w = jax.nn.sigmoid(ga)

    # LA path
    la = bn(conv1x1(x, params['la_w1'], params['la_b1']), params['la_bn1'])
    la = jax.nn.relu(la)
    la = bn(conv1x1(la, params['la_w2'], params['la_b2']), params['la_bn2'])
    lca_w = jax.nn.sigmoid(la)

    return gca_w + lca_w + x


if __name__ == "__main__":
    channels, r = 128, 4
    B, H, W = 2, 16, 16

    key = jax.random.PRNGKey(0)
    kx, kp = jax.random.split(key)
    x = jax.random.normal(kx, (B, channels, H, W), dtype=jnp.float32)
    params = init_params(kp, channels, r)

    out = jax.block_until_ready(lgca_forward(x, params))
    assert out.shape == (B, channels, H, W)

    ref = jax.block_until_ready(lgca_reference(x, params))
    np.testing.assert_allclose(np.asarray(out), np.asarray(ref),
                               rtol=1e-4, atol=1e-4)
    print("KERNEL_OK")
</pallas_src>

<mosaic_0001>
module attributes {stable_mosaic.version = 11 : i64} {
  func.func @_lgca_kernel(%arg0: i32, %arg1: memref<1x256x128xf32, #tpu.memory_space<vmem>>, %arg2: memref<128x32xf32, #tpu.memory_space<vmem>>, %arg3: memref<1x32xf32, #tpu.memory_space<vmem>>, %arg4: memref<32x128xf32, #tpu.memory_space<vmem>>, %arg5: memref<1x128xf32, #tpu.memory_space<vmem>>, %arg6: memref<128x32xf32, #tpu.memory_space<vmem>>, %arg7: memref<1x32xf32, #tpu.memory_space<vmem>>, %arg8: memref<32x128xf32, #tpu.memory_space<vmem>>, %arg9: memref<1x128xf32, #tpu.memory_space<vmem>>, %arg10: memref<1x256x128xf32, #tpu.memory_space<vmem>>) attributes {dimension_semantics = [#tpu.dimension_semantics<parallel>], iteration_bounds = array<i64: 2>, scalar_prefetch = 0 : i64, scratch_operands = 0 : i64, tpu.core_type = #tpu.core_type<tc>, window_params = [{transform_indices = @transform_0, window_bounds = array<i64: 1, 256, 128>}, {pipeline_mode = #tpu.pipeline_mode<synchronous>, transform_indices = @transform_1, window_bounds = array<i64: 128, 32>}, {pipeline_mode = #tpu.pipeline_mode<synchronous>, transform_indices = @transform_2, window_bounds = array<i64: 1, 32>}, {pipeline_mode = #tpu.pipeline_mode<synchronous>, transform_indices = @transform_3, window_bounds = array<i64: 32, 128>}, {pipeline_mode = #tpu.pipeline_mode<synchronous>, transform_indices = @transform_4, window_bounds = array<i64: 1, 128>}, {pipeline_mode = #tpu.pipeline_mode<synchronous>, transform_indices = @transform_5, window_bounds = array<i64: 128, 32>}, {pipeline_mode = #tpu.pipeline_mode<synchronous>, transform_indices = @transform_6, window_bounds = array<i64: 1, 32>}, {pipeline_mode = #tpu.pipeline_mode<synchronous>, transform_indices = @transform_7, window_bounds = array<i64: 32, 128>}, {pipeline_mode = #tpu.pipeline_mode<synchronous>, transform_indices = @transform_8, window_bounds = array<i64: 1, 128>}, {transform_indices = @transform_9, window_bounds = array<i64: 1, 256, 128>}]} {
    %c0 = arith.constant 0 : index
    %c0_0 = arith.constant 0 : index
    %c0_1 = arith.constant 0 : index
    %0 = vector.load %arg1[%c0, %c0_0, %c0_1] : memref<1x256x128xf32, #tpu.memory_space<vmem>>, vector<1x256x128xf32>
    %1 = vector.shape_cast %0 : vector<1x256x128xf32> to vector<256x128xf32>
    %c0_2 = arith.constant 0 : index
    %c0_3 = arith.constant 0 : index
    %2 = vector.load %arg2[%c0_2, %c0_3] : memref<128x32xf32, #tpu.memory_space<vmem>>, vector<128x32xf32>
    %cst = arith.constant dense<0.000000e+00> : vector<256x32xf32>
    %3 = tpu.matmul %1, %2, %cst {dimension_numbers = #tpu.dot_dimension_numbers<[1], [0], [0], [1], [0, 0, 1, 1], [], []>} : vector<256x128xf32>, vector<128x32xf32>, vector<256x32xf32> -> vector<256x32xf32>
    %c0_4 = arith.constant 0 : index
    %c0_5 = arith.constant 0 : index
    %4 = vector.load %arg3[%c0_4, %c0_5] : memref<1x32xf32, #tpu.memory_space<vmem>>, vector<1x32xf32>
    %5 = vector.broadcast %4 : vector<1x32xf32> to vector<256x32xf32>
    %6 = arith.addf %3, %5 : vector<256x32xf32>
    %cst_6 = arith.constant 0.000000e+00 : f32
    %7 = vector.broadcast %cst_6 : f32 to vector<256x32xf32>
    %8 = arith.maximumf %6, %7 : vector<256x32xf32>
    %c0_7 = arith.constant 0 : index
    %c0_8 = arith.constant 0 : index
    %9 = vector.load %arg4[%c0_7, %c0_8] : memref<32x128xf32, #tpu.memory_space<vmem>>, vector<32x128xf32>
    %cst_9 = arith.constant dense<0.000000e+00> : vector<256x128xf32>
    %10 = tpu.matmul %8, %9, %cst_9 {dimension_numbers = #tpu.dot_dimension_numbers<[1], [0], [0], [1], [0, 0, 1, 1], [], []>} : vector<256x32xf32>, vector<32x128xf32>, vector<256x128xf32> -> vector<256x128xf32>
    %c0_10 = arith.constant 0 : index
    %c0_11 = arith.constant 0 : index
    %11 = vector.load %arg5[%c0_10, %c0_11] : memref<1x128xf32, #tpu.memory_space<vmem>>, vector<1x128xf32>
    %12 = vector.broadcast %11 : vector<1x128xf32> to vector<256x128xf32>
    %13 = arith.addf %10, %12 : vector<256x128xf32>
    %14 = arith.negf %13 : vector<256x128xf32>
    %15 = math.exp %14 : vector<256x128xf32>
    %cst_12 = arith.constant 1.000000e+00 : f32
    %16 = vector.broadcast %cst_12 : f32 to vector<256x128xf32>
    %17 = arith.addf %16, %15 : vector<256x128xf32>
    %18 = arith.divf %16, %17 : vector<256x128xf32>
    %cst_13 = arith.constant dense<0.000000e+00> : vector<128xf32>
    %19 = vector.multi_reduction <add>, %1, %cst_13 [0] : vector<256x128xf32> to vector<128xf32>
    %20 = vector.shape_cast %19 : vector<128xf32> to vector<1x128xf32>
    %cst_14 = arith.constant 3.906250e-03 : f32
    %21 = vector.broadcast %cst_14 : f32 to vector<1x128xf32>
    %22 = arith.mulf %20, %21 : vector<1x128xf32>
    %c0_15 = arith.constant 0 : index
    %c0_16 = arith.constant 0 : index
    %23 = vector.load %arg6[%c0_15, %c0_16] : memref<128x32xf32, #tpu.memory_space<vmem>>, vector<128x32xf32>
    %cst_17 = arith.constant dense<0.000000e+00> : vector<1x32xf32>
    %24 = tpu.matmul %22, %23, %cst_17 {dimension_numbers = #tpu.dot_dimension_numbers<[1], [0], [0], [1], [0, 0, 1, 1], [], []>} : vector<1x128xf32>, vector<128x32xf32>, vector<1x32xf32> -> vector<1x32xf32>
    %c0_18 = arith.constant 0 : index
    %c0_19 = arith.constant 0 : index
    %25 = vector.load %arg7[%c0_18, %c0_19] : memref<1x32xf32, #tpu.memory_space<vmem>>, vector<1x32xf32>
    %26 = arith.addf %24, %25 : vector<1x32xf32>
    %cst_20 = arith.constant 0.000000e+00 : f32
    %27 = vector.broadcast %cst_20 : f32 to vector<1x32xf32>
    %28 = arith.maximumf %26, %27 : vector<1x32xf32>
    %c0_21 = arith.constant 0 : index
    %c0_22 = arith.constant 0 : index
    %29 = vector.load %arg8[%c0_21, %c0_22] : memref<32x128xf32, #tpu.memory_space<vmem>>, vector<32x128xf32>
    %cst_23 = arith.constant dense<0.000000e+00> : vector<1x128xf32>
    %30 = tpu.matmul %28, %29, %cst_23 {dimension_numbers = #tpu.dot_dimension_numbers<[1], [0], [0], [1], [0, 0, 1, 1], [], []>} : vector<1x32xf32>, vector<32x128xf32>, vector<1x128xf32> -> vector<1x128xf32>
    %c0_24 = arith.constant 0 : index
    %c0_25 = arith.constant 0 : index
    %31 = vector.load %arg9[%c0_24, %c0_25] : memref<1x128xf32, #tpu.memory_space<vmem>>, vector<1x128xf32>
    %32 = arith.addf %30, %31 : vector<1x128xf32>
    %33 = arith.negf %32 : vector<1x128xf32>
    %34 = math.exp %33 : vector<1x128xf32>
    %cst_26 = arith.constant 1.000000e+00 : f32
    %35 = vector.broadcast %cst_26 : f32 to vector<1x128xf32>
    %36 = arith.addf %35, %34 : vector<1x128xf32>
    %37 = arith.divf %35, %36 : vector<1x128xf32>
    %38 = vector.broadcast %37 : vector<1x128xf32> to vector<256x128xf32>
    %39 = arith.addf %18, %38 : vector<256x128xf32>
    %40 = arith.addf %39, %1 : vector<256x128xf32>
    %c0_27 = arith.constant 0 : index
    %c0_28 = arith.constant 0 : index
    %c0_29 = arith.constant 0 : index
    %41 = vector.load %arg10[%c0_27, %c0_28, %c0_29] : memref<1x256x128xf32, #tpu.memory_space<vmem>>, vector<1x256x128xf32>
    %42 = vector.shape_cast %41 : vector<1x256x128xf32> to vector<256x128xf32>
    %43 = vector.shape_cast %40 : vector<256x128xf32> to vector<1x256x128xf32>
    tpu.vector_store %arg10[%c0_27, %c0_28, %c0_29], %43 {strides = array<i32>} : memref<1x256x128xf32, #tpu.memory_space<vmem>>, vector<1x256x128xf32>,
    return
  }
  func.func @transform_0(%arg0: i32) -> (i32, i32, i32) {
    %c0_i32 = arith.constant 0 : i32
    %c0_i32_0 = arith.constant 0 : i32
    %c0_i32_1 = arith.constant 0 : i32
    return %arg0, %c0_i32, %c0_i32_0 : i32, i32, i32
  }
  func.func @transform_1(%arg0: i32) -> (i32, i32) {
    %c0_i32 = arith.constant 0 : i32
    %c0_i32_0 = arith.constant 0 : i32
    %c0_i32_1 = arith.constant 0 : i32
    return %c0_i32, %c0_i32_0 : i32, i32
  }
  func.func @transform_2(%arg0: i32) -> (i32, i32) {
    %c0_i32 = arith.constant 0 : i32
    %c0_i32_0 = arith.constant 0 : i32
    %c0_i32_1 = arith.constant 0 : i32
    return %c0_i32, %c0_i32_0 : i32, i32
  }
  func.func @transform_3(%arg0: i32) -> (i32, i32) {
    %c0_i32 = arith.constant 0 : i32
    %c0_i32_0 = arith.constant 0 : i32
    %c0_i32_1 = arith.constant 0 : i32
    return %c0_i32, %c0_i32_0 : i32, i32
  }
  func.func @transform_4(%arg0: i32) -> (i32, i32) {
    %c0_i32 = arith.constant 0 : i32
    %c0_i32_0 = arith.constant 0 : i32
    %c0_i32_1 = arith.constant 0 : i32
    return %c0_i32, %c0_i32_0 : i32, i32
  }
  func.func @transform_5(%arg0: i32) -> (i32, i32) {
    %c0_i32 = arith.constant 0 : i32
    %c0_i32_0 = arith.constant 0 : i32
    %c0_i32_1 = arith.constant 0 : i32
    return %c0_i32, %c0_i32_0 : i32, i32
  }
  func.func @transform_6(%arg0: i32) -> (i32, i32) {
    %c0_i32 = arith.constant 0 : i32
    %c0_i32_0 = arith.constant 0 : i32
    %c0_i32_1 = arith.constant 0 : i32
    return %c0_i32, %c0_i32_0 : i32, i32
  }
  func.func @transform_7(%arg0: i32) -> (i32, i32) {
    %c0_i32 = arith.constant 0 : i32
    %c0_i32_0 = arith.constant 0 : i32
    %c0_i32_1 = arith.constant 0 : i32
    return %c0_i32, %c0_i32_0 : i32, i32
  }
  func.func @transform_8(%arg0: i32) -> (i32, i32) {
    %c0_i32 = arith.constant 0 : i32
    %c0_i32_0 = arith.constant 0 : i32
    %c0_i32_1 = arith.constant 0 : i32
    return %c0_i32, %c0_i32_0 : i32, i32
  }
  func.func @transform_9(%arg0: i32) -> (i32, i32, i32) {
    %c0_i32 = arith.constant 0 : i32
    %c0_i32_0 = arith.constant 0 : i32
    %c0_i32_1 = arith.constant 0 : i32
    return %arg0, %c0_i32, %c0_i32_0 : i32, i32, i32
  }
}

</mosaic_0001>

<bundles_post_ra>
// kernel: tpu_custom_call.1
= control target key start
LH: loop header
LB: loop body
LE: loop exit
PB: predicated region body
PF: predicated region fallthrough
CT: control target
= control target key end

     0   :  { %14 = vsyncpa [#allocation3], 0  ;;  %s3134_s0 = inlined_call_operand.hbm [shape: f32[2,256,128], index: 0, kind: input, shape index: {}]   ;;  %s3135_s1 = inlined_call_operand.vmem [shape: f32[128,32], index: 1, kind: input, shape index: {}]   ;;  %s3136_s2 = inlined_call_operand.vmem [shape: f32[1,32], index: 2, kind: input, shape index: {}]   ;;  %s3137_s3 = inlined_call_operand.vmem [shape: f32[32,128], index: 3, kind: input, shape index: {}]   ;;  %s3138_s4 = inlined_call_operand.vmem [shape: f32[1,128], index: 4, kind: input, shape index: {}]   ;;  %s3139_s5 = inlined_call_operand.vmem [shape: f32[128,32], index: 5, kind: input, shape index: {}]   ;;  %s3140_s6 = inlined_call_operand.vmem [shape: f32[1,32], index: 6, kind: input, shape index: {}]   ;;  %s3141_s7 = inlined_call_operand.vmem [shape: f32[32,128], index: 7, kind: input, shape index: {}]   ;;  %s3142_s8 = inlined_call_operand.vmem [shape: f32[1,128], index: 8, kind: input, shape index: {}]   ;;  %s3143_s9 = inlined_call_operand.hbm [shape: f32[2,256,128], index: 9, kind: output, shape index: {}]  }
   0x1   :  { %16 = vsyncpa [#allocation3 + $0x1], 0 }
   0x2   :  { %17 = vsyncpa [#allocation4], 0 }
   0x3   :  { %19 = vsyncpa [#allocation4 + $0x1], 0  ;;  %s2401_s30 = smov 0   ;;  %s2403_s10 = smov 0  }
   0x4   :  { %s2405_s11 = smov 0   ;;  %s2407_s12 = smov 0  }
   0x5 LB: > { %s2422_s13 = sadd.s32 4294967295, %s2340_s12   ;;  %s1585_s14 = sadd.s32 4294967294, %s2340_s12   ;;  %s2340_s12 = sphi %s2407_s12, %s3158_s12   ;;  %s2336_s11 = sphi %s2405_s11, %s3157_s11   ;;  %s2332_s10 = sphi %s2403_s10, %s3156_s10   ;;  %s2328_s30 = sphi %s2401_s30, %s3155_s30  }
   0x6   : > { %s2426_s15 = sadd.s32 1, %s2340_s12   ;;  %s32_s16 = sadd.s32 1, %s2336_s11 }
   0x7   : > { %s29_s17 = ssub.s32 %s2340_s12, %s2426_s15  ;;  %p39_p0 = scmp.ne.s32.totalorder %s2336_s11, %s2332_s10 }
   0x8   : > { %p30_p1 = scmp.eq.s32.totalorder %s29_s17, 0  ;;  %p40_p2 = scmp.eq.s32.totalorder %s2340_s12, 0 }
   0x9   : > { %p45_p3 = scmp.ne.s32.totalorder %s2332_s10, %s2328_s30  ;;  %p46_p4 = scmp.eq.s32.totalorder %s2422_s13, 0 }
   0xa   : > { %s2438_s18 = scalar_select %p30_p1, %s2336_s11, %s32_s16  }
   0xb   : > { %p2440_p5 = por %p40_p2, %p39_p0  ;;  %p2444_p6 = por %p46_p4, %p45_p3 }
   0xc   : > { %p237_p7 = scmp.eq.s32.totalorder %s2422_s13, 1  ;;  %p243_p8 = scmp.eq.s32.totalorder %s1585_s14, 1 }
   0xd   : > { %p2039_p10 = scmp.lt.s32.totalorder %s2340_s12, 2  ;;  %s287_s23 = sand.u32 1, %s2336_s11  }
   0xe   : > { %p2451_p11 = por %p237_p7, %p39_p0  ;;  %p2455_p12 = por %p243_p8, %p45_p3 }
   0xf   : > { %s1667_s24 = sshll.u32 %s2340_s12, 12  ;;  %s1588_s25 = sshll.u32 %s287_s23, 8 }
  0x10   : > { %s3148_s21 = scalar_select %p2451_p11, 1, 0 }
  0x11   : > { %s3149_s22 = scalar_select %p2455_p12, 1, 0 }
  0x12   : > { %s2464_s28 = scalar_lea.hbm %s3134_s0, %s1667_s24  ;;  %s291_s29 = scalar_lea.vmem [#allocation2], %s1588_s25 }
  0x13   : > { %s298_s14 = sshll.u32 %s291_s29, 4  ;;  %p2468_p13 = pnand %p2039_p10, %p2440_p5  ;;  %s2472_s14 = int_to_ptr.vmem [resolvable:$true] %s298_s14 }
  0x14   : > { %s2474_s17 = scalar_lea.sflag [#allocation3], %s287_s23  ;;  %s2244_s26 = scalar_lea.hbm %s2464_s28, 4096 }
  0x15   : > { %p2245_p0 = scmp.ne.s32.totalorder %s2464_s28, %s2244_s26  ;;  %p2246_p1 = pneg %p2468_p13 }
  0x16   : > { %s2249_s25 = scalar_lea.hbm %s3134_s0, 8192  ;;  %p2250_p4 = scmp.lt.u32.totalorder %s2464_s28, %s3134_s0 }
  0x17   : > { %p2247_p2 = pnand %p2246_p1, %p2245_p0  ;;  %p2251_p5 = scmp.lt.u32.totalorder %s2249_s25, %s2244_s26 }
  0x18   : > { %p2253_p8 = scmp.lt.u32.totalorder %s2244_s26, %s2464_s28 }
  0x19   : > { %p2248_p3 = pneg %p2247_p2  ;;  %p2252_p7 = por %p2251_p5, %p2250_p4 }
  0x1b   : > { %p2254_p10 = por %p2253_p8, %p2252_p7 }
  0x1d   : > { %p2255_p9 = pnand %p2254_p10, %p2248_p3 }
  0x1f   : > { %2258 = shalt.err (!%p2255_p9)
}
  0x20   : > { %s2259_s23 = scalar_lea.vmem %s2472_s14, 4096  ;;  %s2342_s24 = smov [#allocation2]  }
  0x21   : > { %p2260_p0 = scmp.ne.s32.totalorder %s2472_s14, %s2259_s23  ;;  %s2264_s19 = sshll.u32 %s2342_s24, 4  ;;  %s2265_s19 = int_to_ptr.vmem [resolvable:$false] %s2264_s19 }
  0x22   : > { %s2266_s27 = scalar_lea.vmem %s2265_s19, 8192  ;;  %p2267_p11 = scmp.lt.s32.totalorder %s2472_s14, %s2265_s19 }
  0x23   : > { %p2262_p2 = pnand %p2260_p0, %p2246_p1  ;;  %p2268_p4 = scmp.lt.s32.totalorder %s2266_s27, %s2259_s23 }
  0x25   : > { %p2263_p12 = pneg %p2262_p2  ;;  %p2269_p5 = por %p2268_p4, %p2267_p11 }
  0x27   : > { %p2270_p7 = pnand %p2269_p5, %p2263_p12 }
  0x29   : > { %2273 = shalt.err (!%p2270_p7)
}
  0x2a   : > { %s2343_s26 = smov 128   ;;  %s2344_s25 = smov 8  }
  0x2b   : > { %2034 = dma.hbm_to_vmem [thread:$0]  (!%p2468_p13), %s2464_s28, 4096, %s2472_s14, %s2474_s17, %s2343_s26, %s2343_s26, %s2344_s25  }
  0x2c   : > { %p1591_p9 = scmp.ge.s32.totalorder %s2340_s12, 1  ;;  %p306_p1 = scmp.lt.s32.totalorder %s2340_s12, 3 }
  0x2e   : > { %p307_p3 = pnand %p1591_p9, %p306_p1 }
  0x2f   : > { %s2505_s29 = sand.u32 (!%p307_p3), 1, %s2332_s10  }
  0x30   : > { %310 = sbr.rel (%p307_p3) target bundleno = 872 (0x368), region = 56  ;;  %s3145_s23 = sshll.u32 (!%p307_p3), %s2505_s29, 8 }
  0x31   : > { %s313_s24 = scalar_lea.sflag (!%p307_p3), [#allocation3], %s2505_s29  ;;  %s2511_s19 = scalar_lea.vmem (!%p307_p3), [#allocation2], %s3145_s23 }
  0x37   : > { %2319 = dma.done.wait (%p2444_p6), %s313_s24, 4096  }
  0x38   : > { %2321 = vsyncadd (%p2444_p6), %s313_s24, 4294963200  ;;  %v383_v0 = vld [vmem:[%s3135_s1] sm:$0xff]  ;;  %v384_v1 = vld [vmem:[%s3135_s1 + $0x8] sm:$0xff]  ;;  %v2345_v62 = vmov 0.0|0.0   ;;  %vm674_vm0 = vcmask 261120   ;;  %vm2346_vm1 = vmmov 0  }
  0x39   : > { %v385_v2 = vld [vmem:[%s3135_s1 + $0x10] sm:$0xff]  ;;  %v1957_v3 = vpack.c.bf16 %v384_v1, %v383_v0  ;;  %v386_v4 = vld [vmem:[%s3135_s1 + $0x18] sm:$0xff]  ;;  %v387_v6 = vld [vmem:[%s3135_s1 + $0x20] sm:$0xff]  ;;  %s3151_s20 = sshll.u32 %s2505_s29, 8  ;;  %s1668_s28 = sshll.u32 %s2422_s13, 12 }
  0x3a   : > { %v1961_v5 = vpack.c.bf16 %v386_v4, %v385_v2  ;;  %v388_v7 = vld [vmem:[%s3135_s1 + $0x28] sm:$0xff]  ;;  %v2536_v9 = vld [vmem:[%s2511_s19] sm:$0xff]  ;;  %v389_v10 = vld [vmem:[%s3135_s1 + $0x30] sm:$0xff]  ;;  %s3010_s24 = scalar_lea.vmem [#allocation5], %s3151_s20  ;;  %s3066_s23 = scalar_lea.hbm %s3143_s9, %s1668_s28 }
  0x3b   : > { %1958 = vmatprep.subr.bf16.mxu0 %v1957_v3  ;;  %v1965_v8 = vpack.c.bf16 %v388_v7, %v387_v6  ;;  %v390_v11 = vld [vmem:[%s3135_s1 + $0x38] sm:$0xff]  ;;  %1807 = vmatprep.mubr.f32.mxu0 %v2536_v9  ;;  %v391_v13 = vld [vmem:[%s3135_s1 + $0x40] sm:$0xff]  ;;  %v392_v14 = vld [vmem:[%s3135_s1 + $0x48] sm:$0xff]  ;;  %s1512_s14 = sshll.u32 %s3010_s24, 4  ;;  %s1499_s13 = scalar_lea.sflag [#allocation4], %s2505_s29  ;;  %s3070_s14 = int_to_ptr.vmem [resolvable:$true] %s1512_s14 }
  0x3c   : > { %1960 = vmatpush3.bf16.msra.mxu0 %v1957_v3  ;;  %v1969_v12 = vpack.c.bf16 %v390_v11, %v389_v10  ;;  %v1973_v15 = vpack.c.bf16 %v392_v14, %v391_v13  ;;  %v393_v16 = vld [vmem:[%s3135_s1 + $0x50] sm:$0xff]  ;;  %v394_v17 = vld [vmem:[%s3135_s1 + $0x58] sm:$0xff]  ;;  %v663_v18 = vld [vmem:[%s3137_s3] sm:$0xff]  ;;  %s2274_s27 = scalar_lea.vmem %s3070_s14, 4096  ;;  %p3152_p11 = scmp.ne.s32.totalorder %s3148_s21, 0 }
  0x3d   : > { %1962 = vmatprep.subr.bf16.mxu0 %v1961_v5  ;;  %v664_v19 = vld [vmem:[%s3137_s3 + $0x8] sm:$0xff]  ;;  %v1977_v20 = vpack.c.bf16 %v394_v17, %v393_v16  ;;  %v395_v22 = vld [vmem:[%s3135_s1 + $0x60] sm:$0xff]  ;;  %v397_v25 = vld [vmem:[%s3135_s1 + $0x70] sm:$0xff]  ;;  %p2275_p6 = scmp.ne.s32.totalorder %s3070_s14, %s2274_s27 }
  0x3e   : > { %v1989_v21 = vpack.c.bf16 %v664_v19, %v663_v18  ;;  %v396_v23 = vld [vmem:[%s3135_s1 + $0x68] sm:$0xff]  ;;  %v398_v26 = vld [vmem:[%s3135_s1 + $0x78] sm:$0xff]  ;;  %v2579_v29 = vld [vmem:[%s2511_s19 + $0x10] sm:$0xff] }
  0x3f   : > { %v1981_v24 = vpack.c.bf16 %v396_v23, %v395_v22  ;;  %v1985_v27 = vpack.c.bf16 %v398_v26, %v397_v25  ;;  %v2576_v28 = vld [vmem:[%s2511_s19 + $0x8] sm:$0xff]  ;;  %v2584_v30 = vld [vmem:[%s2511_s19 + $0x18] sm:$0xff]  ;;  %v2587_v31 = vld [vmem:[%s2511_s19 + $0x20] sm:$0xff]  ;;  %p2276_p12 = pnand %p2275_p6, %p3152_p11 }
  0x40   : > { %1964 = vmatpush3.bf16.msra.mxu0 %v1961_v5  ;;  %1990 = vmatprep.subr.bf16.mxu1 %v1989_v21  ;;  %v2592_v32 = vld [vmem:[%s2511_s19 + $0x28] sm:$0xff]  ;;  %v2595_v33 = vld [vmem:[%s2511_s19 + $0x30] sm:$0xff]  ;;  %v2600_v34 = vld [vmem:[%s2511_s19 + $0x38] sm:$0xff]  ;;  %v1188_v63 = vadd.f32 %v2576_v28, %v2536_v9 }
  0x41   : > { %1966 = vmatprep.subr.bf16.mxu0 %v1965_v8  ;;  %1992 = vmatpush3.bf16.msra.mxu1 %v1989_v21  ;;  %v2603_v35 = vld [vmem:[%s2511_s19 + $0x40] sm:$0xff]  ;;  %v360_v36 = vld [vmem:[%s2511_s19 + $0x48] sm:$0xff]  ;;  %v361_v37 = vld [vmem:[%s2511_s19 + $0x50] sm:$0xff]  ;;  %p2277_p13 = pneg %p2276_p12 }
  0x42   : > { %v362_v38 = vld [vmem:[%s2511_s19 + $0x58] sm:$0xff]  ;;  %v363_v39 = vld [vmem:[%s2511_s19 + $0x60] sm:$0xff]  ;;  %v364_v40 = vld [vmem:[%s2511_s19 + $0x68] sm:$0xff]  ;;  %v1189_v0 = vadd.f32 %v1188_v63, %v2579_v29 }
  0x43   : > { %v365_v41 = vld [vmem:[%s2511_s19 + $0x70] sm:$0xff]  ;;  %v366_v42 = vld [vmem:[%s2511_s19 + $0x78] sm:$0xff]  ;;  %v367_v43 = vld [vmem:[%s2511_s19 + $0x80] sm:$0xff] }
  0x44   : > { %1968 = vmatpush3.bf16.msra.mxu0 %v1965_v8  ;;  %v368_v44 = vld [vmem:[%s2511_s19 + $0x88] sm:$0xff]  ;;  %v369_v45 = vld [vmem:[%s2511_s19 + $0x90] sm:$0xff]  ;;  %v370_v46 = vld [vmem:[%s2511_s19 + $0x98] sm:$0xff]  ;;  %v1190_v1 = vadd.f32 %v1189_v0, %v2584_v30 }
  0x45   : > { %1970 = vmatprep.subr.bf16.mxu0 %v1969_v12  ;;  %v371_v47 = vld [vmem:[%s2511_s19 + $0xa0] sm:$0xff]  ;;  %v372_v48 = vld [vmem:[%s2511_s19 + $0xa8] sm:$0xff]  ;;  %v373_v49 = vld [vmem:[%s2511_s19 + $0xb0] sm:$0xff] }
  0x46   : > { %v2622_v50 = vld [vmem:[%s2511_s19 + $0xb8] sm:$0xff]  ;;  %v2625_v51 = vld [vmem:[%s2511_s19 + $0xc0] sm:$0xff]  ;;  %v2630_v52 = vld [vmem:[%s2511_s19 + $0xc8] sm:$0xff]  ;;  %v1191_v2 = vadd.f32 %v1190_v1, %v2587_v31 }
  0x47   : > { %v2633_v53 = vld [vmem:[%s2511_s19 + $0xd0] sm:$0xff]  ;;  %v2638_v54 = vld [vmem:[%s2511_s19 + $0xd8] sm:$0xff]  ;;  %v2641_v55 = vld [vmem:[%s2511_s19 + $0xe0] sm:$0xff] }
  0x48   : > { %1972 = vmatpush3.bf16.msra.mxu0 %v1969_v12  ;;  %v2646_v56 = vld [vmem:[%s2511_s19 + $0xe8] sm:$0xff]  ;;  %v2649_v57 = vld [vmem:[%s2511_s19 + $0xf0] sm:$0xff]  ;;  %v2654_v58 = vld [vmem:[%s2511_s19 + $0xf8] sm:$0xff]  ;;  %v1192_v3 = vadd.f32 %v1191_v2, %v2592_v32 }
  0x49   : > { %1974 = vmatprep.subr.bf16.mxu0 %v1973_v15  ;;  %v665_v59 = vld [vmem:[%s3137_s3 + $0x10] sm:$0xff]  ;;  %v666_v60 = vld [vmem:[%s3137_s3 + $0x18] sm:$0xff]  ;;  %v2676_v19 = vld [vmem:[%s3136_s2] ss:$0 sm:$0xff] }
  0x4a   : > { %v1993_v61 = vpack.c.bf16 %v666_v60, %v665_v59  ;;  %v1193_v4 = vadd.f32 %v1192_v3, %v2595_v33  ;;  %v1227_v25 = vld [vmem:[%s3139_s5 + $0x8] sm:$0xff]  ;;  %v1232_v63 = vld [vmem:[%s3139_s5 + $0x30] sm:$0xff] }
  0x4c   : > { %1976 = vmatpush3.bf16.msra.mxu0 %v1973_v15  ;;  %1994 = vmatprep.subr.bf16.mxu1 %v1993_v61  ;;  %v1194_v5 = vadd.f32 %v1193_v4, %v2600_v34 }
  0x4d   : > { %1978 = vmatprep.subr.bf16.mxu0 %v1977_v20  ;;  %1996 = vmatpush3.bf16.msra.mxu1 %v1993_v61 }
  0x4e   : > { %1997 = vmatprep.subr.bf16.mxu1 %v2345_v62  ;;  %v1195_v6 = vadd.f32 %v1194_v5, %v2603_v35 }
  0x50   : > { %1980 = vmatpush3.bf16.msra.mxu0 %v1977_v20  ;;  %v1196_v7 = vadd.f32 %v1195_v6, %v360_v36 }
  0x51   : > { %1982 = vmatprep.subr.bf16.mxu0 %v1981_v24 }
  0x52   : > { %v1197_v8 = vadd.f32 %v1196_v7, %v361_v37 }
  0x54   : > { %1984 = vmatpush3.bf16.msra.mxu0 %v1981_v24  ;;  %v1198_v10 = vadd.f32 %v1197_v8, %v362_v38  ;;  %v1226_v24 = vld [vmem:[%s3139_s5] sm:$0xff] }
  0x55   : > { %1986 = vmatprep.subr.bf16.mxu0 %v1985_v27  ;;  %v1234_v8 = vld [vmem:[%s3139_s5 + $0x40] sm:$0xff] }
  0x56   : > { %v1199_v11 = vadd.f32 %v1198_v10, %v363_v39 }
  0x58   : > { %1988 = vmatpush3.bf16.msra.mxu0 %v1985_v27  ;;  %v1200_v12 = vadd.f32 %v1199_v11, %v364_v40 }
  0x5a   : > { %v1201_v9 = vadd.f32 %v1200_v12, %v365_v41 }
  0x5b   : > { %1808 = vmatmul.mubr.f32.vlgmr.msra.gmra.mrb[0].mxu0 %v2576_v28 }
  0x5c   : > { %1810 = vmatprep.mubr.f32.mxu0 %v2579_v29  ;;  %v1202_v13 = vadd.f32 %v1201_v9, %v366_v42 }
  0x5e   : > { %v1203_v14 = vadd.f32 %v1202_v13, %v367_v43 }
  0x5f   : > { %1811 = vmatmul.mubr.f32.gmra.mrb[2].mxu0 %v2584_v30  ;;  %v1998_v30 = vpack.c.bf16 %v1227_v25, %v1226_v24 }
  0x60   : > { %1813 = vmatprep.mubr.f32.mxu0 %v2587_v31  ;;  %v1204_v15 = vadd.f32 %v1203_v14, %v368_v44 }
  0x62   : > { %v1205_v16 = vadd.f32 %v1204_v15, %v369_v45 }
  0x63   : > { %1814 = vmatmul.mubr.f32.gmra.mrb[4].mxu0 %v2592_v32 }
  0x64   : > { %1816 = vmatprep.mubr.f32.mxu0 %v2595_v33  ;;  %v1206_v17 = vadd.f32 %v1205_v16, %v370_v46 }
  0x66   : > { %v1207_v18 = vadd.f32 %v1206_v17, %v371_v47  ;;  %v1236_v17 = vld [vmem:[%s3139_s5 + $0x50] sm:$0xff] }
  0x67   : > { %1817 = vmatmul.mubr.f32.gmra.mrb[6].mxu0 %v2600_v34  ;;  %v1228_v34 = vld [vmem:[%s3139_s5 + $0x10] sm:$0xff] }
  0x68   : > { %1819 = vmatprep.mubr.f32.mxu0 %v2603_v35  ;;  %v1208_v20 = vadd.f32 %v1207_v18, %v372_v48  ;;  %v1229_v35 = vld [vmem:[%s3139_s5 + $0x18] sm:$0xff] }
  0x6a   : > { %v1209_v27 = vadd.f32 %v1208_v20, %v373_v49 }
  0x6b   : > { %1820 = vmatmul.mubr.f32.gmra.mrb[8].mxu0 %v360_v36 }
  0x6c   : > { %1822 = vmatprep.mubr.f32.mxu0 %v361_v37  ;;  %v1210_v37 = vadd.f32 %v1209_v27, %v2622_v50  ;;  %v1238_v27 = vld [vmem:[%s3139_s5 + $0x60] sm:$0xff] }
  0x6f   : > { %1823 = vmatmul.mubr.f32.gmra.mrb[10].mxu0 %v362_v38 }
  0x70   : > { %1825 = vmatprep.mubr.f32.mxu0 %v363_v39 }
  0x73   : > { %1826 = vmatmul.mubr.f32.gmra.mrb[12].mxu0 %v364_v40  ;;  %v2001_v40 = vpack.c.bf16 %v1229_v35, %v1228_v34 }
  0x74   : > { %1828 = vmatprep.mubr.f32.mxu0 %v365_v41 }
  0x77   : > { %1829 = vmatmul.mubr.f32.gmra.mrb[14].mxu0 %v366_v42 }
  0x78   : > { %1831 = vmatprep.mubr.f32.mxu0 %v367_v43 }
  0x7b   : > { %1832 = vmatmul.mubr.f32.gmra.mrb[16].mxu0 %v368_v44  ;;  %v1230_v44 = vld [vmem:[%s3139_s5 + $0x20] sm:$0xff] }
  0x7c   : > { %1834 = vmatprep.mubr.f32.mxu0 %v369_v45  ;;  %v1231_v45 = vld [vmem:[%s3139_s5 + $0x28] sm:$0xff] }
  0x7f   : > { %1835 = vmatmul.mubr.f32.gmra.mrb[18].mxu0 %v370_v46 }
  0x80   : > { %1837 = vmatprep.mubr.f32.mxu0 %v371_v47  ;;  %v1211_v47 = vadd.f32 %v1210_v37, %v2625_v51 }
  0x82   : > { %v1212_v1 = vadd.f32 %v1211_v47, %v2630_v52 }
  0x83   : > { %1838 = vmatmul.mubr.f32.gmra.mrb[20].mxu0 %v372_v48 }
  0x84   : > { %1840 = vmatprep.mubr.f32.mxu0 %v373_v49  ;;  %v1213_v11 = vadd.f32 %v1212_v1, %v2633_v53 }
  0x86   : > { %v1214_v20 = vadd.f32 %v1213_v11, %v2638_v54 }
  0x87   : > { %1841 = vmatmul.mubr.f32.gmra.mrb[22].mxu0 %v2622_v50  ;;  %v2004_v50 = vpack.c.bf16 %v1231_v45, %v1230_v44 }
  0x88   : > { %1843 = vmatprep.mubr.f32.mxu0 %v2625_v51  ;;  %v1233_v51 = vld [vmem:[%s3139_s5 + $0x38] sm:$0xff] }
  0x89   : > { %v2007_v4 = vpack.c.bf16 %v1233_v51, %v1232_v63 }
  0x8b   : > { %1844 = vmatmul.mubr.f32.gmra.mrb[24].mxu0 %v2630_v52  ;;  %v1235_v52 = vld [vmem:[%s3139_s5 + $0x48] sm:$0xff] }
  0x8c   : > { %1846 = vmatprep.mubr.f32.mxu0 %v2633_v53  ;;  %v2010_v13 = vpack.c.bf16 %v1235_v52, %v1234_v8  ;;  %v1237_v53 = vld [vmem:[%s3139_s5 + $0x58] sm:$0xff] }
  0x8f   : > { %1847 = vmatmul.mubr.f32.gmra.mrb[26].mxu0 %v2638_v54  ;;  %v1239_v54 = vld [vmem:[%s3139_s5 + $0x68] sm:$0xff] }
  0x90   : > { %1849 = vmatprep.mubr.f32.mxu0 %v2641_v55 }
  0x93   : > { %1850 = vmatmul.mubr.f32.gmra.mrb[28].mxu0 %v2646_v56 }
  0x94   : > { %1852 = vmatprep.mubr.f32.mxu0 %v2649_v57 }
  0x97   : > { %1853 = vmatmul.mubr.f32.gmra.mrb[30].mxu0 %v2654_v58 }
 0x12e   : > { %v1809_v21 = vpop.f32.mrb[0].mxu0 }
 0x12f   : > { %v478_v22 = vadd.f32 %v1809_v21, %v2676_v19  ;;  %v472_v23 = vpop.f32.mrb[1].mxu0 }
 0x130   : > { %v473_v26 = vadd.f32 %v2676_v19, %v472_v23  ;;  %v2013_v23 = vpack.c.bf16 %v1237_v53, %v1236_v17 }
 0x131   : > { %v632_v31 = vmax.f32 %v478_v22, 0.0 }
 0x132   : > { %v631_v28 = vmax.f32 %v473_v26, 0.0  ;;  %v1812_v29 = vpop.f32.mrb[2].mxu0 }
 0x133   : > { %v488_v32 = vadd.f32 %v1812_v29, %v2676_v19  ;;  %v482_v33 = vpop.f32.mrb[3].mxu0  ;;  %v1215_v29 = vadd.f32 %v1214_v20, %v2641_v55  ;;  %v1241_v55 = vld [vmem:[%s3139_s5 + $0x78] sm:$0xff] }
 0x134   : > { %v483_v36 = vadd.f32 %v2676_v19, %v482_v33  ;;  %1863 = vmatprep.mubr.msk.f32.mxu1 %vm674_vm0, %v631_v28 }
 0x135   : > { %1864 = vmatmul.mubr.msk.f32.vlgmr.msra.gmra.mrb[0].mxu1 %vm674_vm0, %v632_v31  ;;  %v634_v41 = vmax.f32 %v488_v32, 0.0  ;;  %v2016_v32 = vpack.c.bf16 %v1239_v54, %v1238_v27 }
 0x136   : > { %v633_v38 = vmax.f32 %v483_v36, 0.0  ;;  %1999 = vmatpush3.bf16.msra.mxu1 %v1998_v30  ;;  %v1815_v39 = vpop.f32.mrb[4].mxu0  ;;  %v1240_v36 = vld [vmem:[%s3139_s5 + $0x70] sm:$0xff] }
 0x137   : > { %v498_v42 = vadd.f32 %v1815_v39, %v2676_v19  ;;  %v492_v43 = vpop.f32.mrb[5].mxu0  ;;  %2000 = vmatprep.subr.bf16.mxu1 %v2345_v62 }
 0x138   : > { %v493_v46 = vadd.f32 %v2676_v19, %v492_v43  ;;  %1866 = vmatprep.mubr.msk.f32.mxu1 %vm674_vm0, %v633_v38  ;;  %v1216_v38 = vadd.f32 %v1215_v29, %v2646_v56 }
 0x139   : > { %1867 = vmatmul.mubr.msk.f32.gmra.mrb[2].mxu1 %vm674_vm0, %v634_v41  ;;  %v636_v59 = vmax.f32 %v498_v42, 0.0  ;;  %v2019_v41 = vpack.c.bf16 %v1241_v55, %v1240_v36 }
 0x13a   : > { %v635_v48 = vmax.f32 %v493_v46, 0.0  ;;  %v1818_v49 = vpop.f32.mrb[6].mxu0  ;;  %2002 = vmatpush3.bf16.msra.mxu1 %v2001_v40  ;;  %v1217_v46 = vadd.f32 %v1216_v38, %v2649_v57  ;;  %v1315_v38 = vld [vmem:[%s3141_s7 + $0x8] sm:$0xff] }
 0x13b   : > { %v508_v60 = vadd.f32 %v1818_v49, %v2676_v19  ;;  %v502_v61 = vpop.f32.mrb[7].mxu0  ;;  %2003 = vmatprep.subr.bf16.mxu1 %v2345_v62 }
 0x13c   : > { %v503_v0 = vadd.f32 %v2676_v19, %v502_v61  ;;  %1869 = vmatprep.mubr.msk.f32.mxu1 %vm674_vm0, %v635_v48 }
 0x13d   : > { %1870 = vmatmul.mubr.msk.f32.gmra.mrb[4].mxu1 %vm674_vm0, %v636_v59  ;;  %v638_v5 = vmax.f32 %v508_v60, 0.0  ;;  %v1218_v60 = vadd.f32 %v1217_v46, %v2654_v58 }
 0x13e   : > { %v637_v2 = vmax.f32 %v503_v0, 0.0  ;;  %v1821_v3 = vpop.f32.mrb[8].mxu0  ;;  %2005 = vmatpush3.bf16.msra.mxu1 %v2004_v50 }
 0x13f   : > { %v518_v6 = vadd.f32 %v1821_v3, %v2676_v19  ;;  %v512_v7 = vpop.f32.mrb[9].mxu0  ;;  %2006 = vmatprep.subr.bf16.mxu1 %v2345_v62 }
 0x140   : > { %v513_v10 = vadd.f32 %v2676_v19, %v512_v7  ;;  %1872 = vmatprep.mubr.msk.f32.mxu1 %vm674_vm0, %v637_v2  ;;  %v1219_v2 = vrot.slane %v1218_v60, 4 }
 0x141   : > { %1873 = vmatmul.mubr.msk.f32.gmra.mrb[6].mxu1 %vm674_vm0, %v638_v5  ;;  %v640_v14 = vmax.f32 %v518_v6, 0.0 }
 0x142   : > { %v639_v12 = vmax.f32 %v513_v10, 0.0  ;;  %v1824_v9 = vpop.f32.mrb[10].mxu0  ;;  %2008 = vmatpush3.bf16.msra.mxu1 %v2007_v4  ;;  %v1220_v8 = vadd.f32 %v1219_v2, %v1218_v60 }
 0x143   : > { %v528_v15 = vadd.f32 %v1824_v9, %v2676_v19  ;;  %v522_v16 = vpop.f32.mrb[11].mxu0  ;;  %2009 = vmatprep.subr.bf16.mxu1 %v2345_v62 }
 0x144   : > { %v523_v18 = vadd.f32 %v2676_v19, %v522_v16  ;;  %1875 = vmatprep.mubr.msk.f32.mxu1 %vm674_vm0, %v639_v12 }
 0x145   : > { %1876 = vmatmul.mubr.msk.f32.gmra.mrb[8].mxu1 %vm674_vm0, %v640_v14  ;;  %v642_v24 = vmax.f32 %v528_v15, 0.0  ;;  %v1221_v14 = vrot.slane %v1220_v8, 2 }
 0x146   : > { %v641_v21 = vmax.f32 %v523_v18, 0.0  ;;  %v1827_v22 = vpop.f32.mrb[12].mxu0  ;;  %2011 = vmatpush3.bf16.msra.mxu1 %v2010_v13 }
 0x147   : > { %v538_v25 = vadd.f32 %v1827_v22, %v2676_v19  ;;  %v532_v26 = vpop.f32.mrb[13].mxu0  ;;  %2012 = vmatprep.subr.bf16.mxu1 %v2345_v62 }
 0x148   : > { %v533_v28 = vadd.f32 %v2676_v19, %v532_v26  ;;  %1878 = vmatprep.mubr.msk.f32.mxu1 %vm674_vm0, %v641_v21  ;;  %v1222_v21 = vadd.f32 %v1221_v14, %v1220_v8  ;;  %v1242_v14 = vld [vmem:[%s3140_s6] sm:$0x1] }
 0x149   : > { %1879 = vmatmul.mubr.msk.f32.gmra.mrb[10].mxu1 %vm674_vm0, %v642_v24  ;;  %v644_v33 = vmax.f32 %v538_v25, 0.0 }
 0x14a   : > { %v643_v30 = vmax.f32 %v533_v28, 0.0  ;;  %v1830_v31 = vpop.f32.mrb[14].mxu0  ;;  %2014 = vmatpush3.bf16.msra.mxu1 %v2013_v23  ;;  %v1223_v54 = vrot.slane %v1222_v21, 1 }
 0x14b   : > { %v548_v34 = vadd.f32 %v1830_v31, %v2676_v19  ;;  %v542_v35 = vpop.f32.mrb[15].mxu0  ;;  %2015 = vmatprep.subr.bf16.mxu1 %v2345_v62 }
 0x14c   : > { %v543_v37 = vadd.f32 %v2676_v19, %v542_v35  ;;  %1881 = vmatprep.mubr.msk.f32.mxu1 %vm674_vm0, %v643_v30 }
 0x14d   : > { %1882 = vmatmul.mubr.msk.f32.gmra.mrb[12].mxu1 %vm674_vm0, %v644_v33  ;;  %v646_v42 = vmax.f32 %v548_v34, 0.0  ;;  %v1224_v34 = vadd.f32 %v1223_v54, %v1222_v21 }
 0x14e   : > { %v645_v39 = vmax.f32 %v543_v37, 0.0  ;;  %v1833_v40 = vpop.f32.mrb[16].mxu0  ;;  %2017 = vmatpush3.bf16.msra.mxu1 %v2016_v32  ;;  %v2347_v37 = vmov 0.0  }
 0x14f   : > { %v558_v43 = vadd.f32 %v1833_v40, %v2676_v19  ;;  %v552_v44 = vpop.f32.mrb[17].mxu0  ;;  %2018 = vmatprep.subr.bf16.mxu1 %v2345_v62  ;;  %v1225_v55 = vmul.f32 0.00390625, %v1224_v34  ;;  %v1316_v40 = vld [vmem:[%s3141_s7 + $0x10] sm:$0xff] }
 0x150   : > { %v553_v45 = vadd.f32 %v2676_v19, %v552_v44  ;;  %1884 = vmatprep.mubr.msk.f32.mxu1 %vm674_vm0, %v645_v39 }
 0x151   : > { %1885 = vmatmul.mubr.msk.f32.gmra.mrb[14].mxu1 %vm674_vm0, %v646_v42  ;;  %v648_v48 = vmax.f32 %v558_v43, 0.0 }
 0x152   : > { %v647_v56 = vmax.f32 %v553_v45, 0.0  ;;  %v1836_v47 = vpop.f32.mrb[18].mxu0  ;;  %2020 = vmatpush3.bf16.msra.mxu1 %v2019_v41  ;;  %v1317_v41 = vld [vmem:[%s3141_s7 + $0x18] sm:$0xff] }
 0x153   : > { %v568_v49 = vadd.f32 %v1836_v47, %v2676_v19  ;;  %v562_v50 = vpop.f32.mrb[19].mxu0  ;;  %2021 = vmatprep.subr.bf16.mxu1 %v2345_v62  ;;  %v2025_v42 = vpack.c.bf16 %v1317_v41, %v1316_v40 }
 0x154   : > { %v563_v59 = vadd.f32 %v2676_v19, %v562_v50  ;;  %1887 = vmatprep.mubr.msk.f32.mxu1 %vm674_vm0, %v647_v56 }
 0x155   : > { %1888 = vmatmul.mubr.msk.f32.gmra.mrb[16].mxu1 %vm674_vm0, %v648_v48  ;;  %v650_v63 = vmax.f32 %v568_v49, 0.0 }
 0x156   : > { %v649_v57 = vmax.f32 %v563_v59, 0.0  ;;  %v1839_v61 = vpop.f32.mrb[20].mxu0 }
 0x157   : > { %v578_v51 = vadd.f32 %v1839_v61, %v2676_v19  ;;  %v572_v0 = vpop.f32.mrb[21].mxu0 }
 0x158   : > { %v573_v1 = vadd.f32 %v2676_v19, %v572_v0  ;;  %1890 = vmatprep.mubr.msk.f32.mxu1 %vm674_vm0, %v649_v57 }
 0x159   : > { %1891 = vmatmul.mubr.msk.f32.gmra.mrb[18].mxu1 %vm674_vm0, %v650_v63  ;;  %v652_v5 = vmax.f32 %v578_v51, 0.0 }
 0x15a   : > { %v651_v3 = vmax.f32 %v573_v1, 0.0  ;;  %v1842_v4 = vpop.f32.mrb[22].mxu0 }
 0x15b   : > { %v588_v58 = vadd.f32 %v1842_v4, %v2676_v19  ;;  %v582_v6 = vpop.f32.mrb[23].mxu0 }
 0x15c   : > { %v583_v7 = vadd.f32 %v2676_v19, %v582_v6  ;;  %1893 = vmatprep.mubr.msk.f32.mxu1 %vm674_vm0, %v651_v3 }
 0x15d   : > { %1894 = vmatmul.mubr.msk.f32.gmra.mrb[20].mxu1 %vm674_vm0, %v652_v5  ;;  %v654_v11 = vmax.f32 %v588_v58, 0.0 }
 0x15e   : > { %v653_v52 = vmax.f32 %v583_v7, 0.0  ;;  %v1845_v10 = vpop.f32.mrb[24].mxu0 }
 0x15f   : > { %v598_v12 = vadd.f32 %v1845_v10, %v2676_v19  ;;  %v592_v9 = vpop.f32.mrb[25].mxu0 }
 0x160   : > { %v593_v13 = vadd.f32 %v2676_v19, %v592_v9  ;;  %1896 = vmatprep.mubr.msk.f32.mxu1 %vm674_vm0, %v653_v52 }
 0x161   : > { %1897 = vmatmul.mubr.msk.f32.gmra.mrb[22].mxu1 %vm674_vm0, %v654_v11  ;;  %v656_v17 = vmax.f32 %v598_v12, 0.0 }
 0x162   : > { %v655_v15 = vmax.f32 %v593_v13, 0.0  ;;  %v1848_v16 = vpop.f32.mrb[26].mxu0 }
 0x163   : > { %v608_v53 = vadd.f32 %v1848_v16, %v2676_v19  ;;  %v602_v18 = vpop.f32.mrb[27].mxu0 }
 0x164   : > { %v603_v20 = vadd.f32 %v2676_v19, %v602_v18  ;;  %1899 = vmatprep.mubr.msk.f32.mxu1 %vm674_vm0, %v655_v15  ;;  %v2863_v18 = vld [vmem:[%s3138_s4] ss:$0 sm:$0xff] }
 0x165   : > { %1900 = vmatmul.mubr.msk.f32.gmra.mrb[24].mxu1 %vm674_vm0, %v656_v17  ;;  %v658_v24 = vmax.f32 %v608_v53, 0.0 }
 0x166   : > { %v657_v22 = vmax.f32 %v603_v20, 0.0  ;;  %v1851_v23 = vpop.f32.mrb[28].mxu0 }
 0x167   : > { %v618_v25 = vadd.f32 %v1851_v23, %v2676_v19  ;;  %v612_v26 = vpop.f32.mrb[29].mxu0 }
 0x168   : > { %v613_v27 = vadd.f32 %v2676_v19, %v612_v26  ;;  %1902 = vmatprep.mubr.msk.f32.mxu1 %vm674_vm0, %v657_v22 }
 0x169   : > { %1903 = vmatmul.mubr.msk.f32.gmra.mrb[26].mxu1 %vm674_vm0, %v658_v24  ;;  %v660_v30 = vmax.f32 %v618_v25, 0.0 }
 0x16a   : > { %v659_v28 = vmax.f32 %v613_v27, 0.0  ;;  %v1854_v29 = vpop.f32.mrb[30].mxu0 }
 0x16b   : > { %v628_v31 = vadd.f32 %v1854_v29, %v2676_v19  ;;  %v622_v32 = vpop.f32.mrb[31].mxu0 }
 0x16c   : > { %v623_v33 = vadd.f32 %v2676_v19, %v622_v32  ;;  %1905 = vmatprep.mubr.msk.f32.mxu1 %vm674_vm0, %v659_v28  ;;  %v1314_v19 = vld [vmem:[%s3141_s7] sm:$0xff] }
 0x16d   : > { %1906 = vmatmul.mubr.msk.f32.gmra.mrb[28].mxu1 %vm674_vm0, %v660_v30  ;;  %v662_v36 = vmax.f32 %v628_v31, 0.0  ;;  %v2022_v39 = vpack.c.bf16 %v1315_v38, %v1314_v19 }
 0x16e   : > { %v661_v35 = vmax.f32 %v623_v33, 0.0 }
 0x170   : > { %1908 = vmatprep.mubr.msk.f32.mxu1 %vm674_vm0, %v661_v35 }
 0x171   : > { %1909 = vmatmul.mubr.msk.f32.gmra.mrb[30].mxu1 %vm674_vm0, %v662_v36 }
 0x172   : > { %1943 = vmatprep.mubr.msk.f32.mxu1 %vm2346_vm1, %v2347_v37 }
 0x175   : > { %1944 = vmatmul.mubr.f32.vlgmr.msra.gmra.mrb[32].mxu1 %v1225_v55 }
 0x176   : > { %1954 = vmatprep.mubr.msk.f32.mxu1 %vm2346_vm1, %v2347_v37  ;;  %2023 = vmatpush3.bf16.msra.mxu1 %v2022_v39 }
 0x177   : > { %2024 = vmatprep.subr.bf16.mxu1 %v2345_v62 }
 0x17a   : > { %2026 = vmatpush3.bf16.msra.mxu1 %v2025_v42 }
 0x208   : > { %v1865_v43 = vpop.f32.mrb[0].mxu1 }
 0x209   : > { %v837_v44 = vpop.f32.mrb[1].mxu1  ;;  %v843_v20 = vadd.f32 %v1865_v43, %v2863_v18 }
 0x20a   : > { %v838_v21 = vadd.f32 %v2863_v18, %v837_v44 }
 0x20b   : > { %v1629_v22 = vmul.f32 -1.442695, %v843_v20 }
 0x20c   : > { %v1868_v45 = vpop.f32.mrb[2].mxu1  ;;  %v1628_v25 = vmul.f32 -1.442695, %v838_v21 }
 0x20d   : > { %v847_v46 = vpop.f32.mrb[3].mxu1  ;;  %v853_v23 = vadd.f32 %v1868_v45, %v2863_v18  ;;  %2080 = vpow2.f32 %v1629_v22 }
 0x20e   : > { %v848_v24 = vadd.f32 %v2863_v18, %v847_v46  ;;  %2082 = vpow2.f32 %v1628_v25 }
 0x20f   : > { %v1631_v27 = vmul.f32 -1.442695, %v853_v23 }
 0x210   : > { %v1871_v56 = vpop.f32.mrb[4].mxu1  ;;  %v1630_v54 = vmul.f32 -1.442695, %v848_v24 }
 0x211   : > { %v857_v47 = vpop.f32.mrb[5].mxu1  ;;  %v863_v26 = vadd.f32 %v1871_v56, %v2863_v18  ;;  %2084 = vpow2.f32 %v1631_v27 }
 0x212   : > { %v858_v28 = vadd.f32 %v2863_v18, %v857_v47  ;;  %2086 = vpow2.f32 %v1630_v54 }
 0x213   : > { %v1633_v29 = vmul.f32 -1.442695, %v863_v26 }
 0x214   : > { %v1874_v48 = vpop.f32.mrb[6].mxu1  ;;  %v1632_v33 = vmul.f32 -1.442695, %v858_v28 }
 0x215   : > { %v867_v49 = vpop.f32.mrb[7].mxu1  ;;  %v873_v30 = vadd.f32 %v1874_v48, %v2863_v18  ;;  %2088 = vpow2.f32 %v1633_v29 }
 0x216   : > { %v868_v31 = vadd.f32 %v2863_v18, %v867_v49  ;;  %2090 = vpow2.f32 %v1632_v33 }
 0x217   : > { %v1635_v35 = vmul.f32 -1.442695, %v873_v30  ;;  %v2081_v19 = vpop.eup %2080 }
 0x218   : > { %v1877_v50 = vpop.f32.mrb[8].mxu1  ;;  %v1634_v55 = vmul.f32 -1.442695, %v868_v31  ;;  %v2083_v42 = vpop.eup %2082  ;;  %v1093_v43 = vadd.f32 1.0, %v2081_v19 }
 0x219   : > { %v877_v62 = vpop.f32.mrb[9].mxu1  ;;  %v883_v32 = vadd.f32 %v1877_v50, %v2863_v18  ;;  %2092 = vpow2.f32 %v1635_v35  ;;  %v1092_v48 = vadd.f32 1.0, %v2083_v42 }
 0x21a   : > { %v878_v34 = vadd.f32 %v2863_v18, %v877_v62  ;;  %2094 = vpow2.f32 %v1634_v55 }
 0x21b   : > { %v1637_v37 = vmul.f32 -1.442695, %v883_v32  ;;  %v2085_v46 = vpop.eup %2084 }
 0x21c   : > { %v1880_v59 = vpop.f32.mrb[10].mxu1  ;;  %v1636_v38 = vmul.f32 -1.442695, %v878_v34  ;;  %v2087_v47 = vpop.eup %2086 }
 0x21d   : > { %v887_v60 = vpop.f32.mrb[11].mxu1  ;;  %v893_v36 = vadd.f32 %v1880_v59, %v2863_v18  ;;  %2096 = vpow2.f32 %v1637_v37  ;;  %v1095_v59 = vadd.f32 1.0, %v2085_v46 }
 0x21e   : > { %v888_v39 = vadd.f32 %v2863_v18, %v887_v60  ;;  %2098 = vpow2.f32 %v1636_v38 }
 0x21f   : > { %v1639_v40 = vmul.f32 -1.442695, %v893_v36  ;;  %v2089_v49 = vpop.eup %2088 }
 0x220   : > { %v1883_v57 = vpop.f32.mrb[12].mxu1  ;;  %v1638_v45 = vmul.f32 -1.442695, %v888_v39 }
 0x221   : > { %v897_v61 = vpop.f32.mrb[13].mxu1  ;;  %v903_v41 = vadd.f32 %v1883_v57, %v2863_v18  ;;  %2100 = vpow2.f32 %v1639_v40  ;;  %v1094_v57 = vadd.f32 1.0, %v2087_v47 }
 0x222   : > { %v898_v44 = vadd.f32 %v2863_v18, %v897_v61  ;;  %2102 = vrcp.f32 %v1093_v43  ;;  %v2091_v61 = vpop.eup %2090 }
 0x223   : > { %v1641_v56 = vmul.f32 -1.442695, %v903_v41  ;;  %2104 = vpow2.f32 %v1638_v45  ;;  %v1096_v21 = vadd.f32 1.0, %v2091_v61 }
 0x224   : > { %v2820_v63 = vpop.f32.mrb[14].mxu1  ;;  %v1640_v50 = vmul.f32 -1.442695, %v898_v44 }
 0x225   : > { %v2822_v51 = vpop.f32.mrb[15].mxu1  ;;  %v913_v62 = vadd.f32 %v2820_v63, %v2863_v18  ;;  %2106 = vpow2.f32 %v1641_v56 }
 0x226   : > { %v908_v60 = vadd.f32 %v2863_v18, %v2822_v51  ;;  %2108 = vrcp.f32 %v1092_v48 }
 0x227   : > { %2110 = vpow2.f32 %v1640_v50 }
 0x228   : > { %v2824_v0 = vpop.f32.mrb[16].mxu1  ;;  %2112 = vrcp.f32 %v1095_v59 }
 0x229   : > { %v2826_v1 = vpop.f32.mrb[17].mxu1  ;;  %2114 = vrcp.f32 %v1094_v57  ;;  %v923_v51 = vadd.f32 %v2824_v0, %v2863_v18 }
 0x22a   : > { %v918_v26 = vadd.f32 %v2863_v18, %v2826_v1 }
 0x22b   : > { %v1645_v31 = vmul.f32 -1.442695, %v923_v51 }
 0x22c   : > { %v2828_v2 = vpop.f32.mrb[18].mxu1  ;;  %v1644_v0 = vmul.f32 -1.442695, %v918_v26 }
 0x22d   : > { %v2830_v3 = vpop.f32.mrb[19].mxu1  ;;  %v933_v32 = vadd.f32 %v2828_v2, %v2863_v18 }
 0x22e   : > { %v928_v35 = vadd.f32 %v2863_v18, %v2830_v3 }
 0x22f   : > { %v1647_v2 = vmul.f32 -1.442695, %v933_v32 }
 0x230   : > { %v2832_v4 = vpop.f32.mrb[20].mxu1  ;;  %v1646_v3 = vmul.f32 -1.442695, %v928_v35 }
 0x231   : > { %v2834_v5 = vpop.f32.mrb[21].mxu1  ;;  %v943_v37 = vadd.f32 %v2832_v4, %v2863_v18 }
 0x232   : > { %v938_v38 = vadd.f32 %v2863_v18, %v2834_v5 }
 0x233   : > { %v1649_v43 = vmul.f32 -1.442695, %v943_v37 }
 0x234   : > { %v2836_v58 = vpop.f32.mrb[22].mxu1  ;;  %v1648_v45 = vmul.f32 -1.442695, %v938_v38 }
 0x235   : > { %v2838_v6 = vpop.f32.mrb[23].mxu1  ;;  %v953_v4 = vadd.f32 %v2836_v58, %v2863_v18 }
 0x236   : > { %v948_v5 = vadd.f32 %v2863_v18, %v2838_v6 }
 0x238   : > { %v2840_v7 = vpop.f32.mrb[24].mxu1 }
 0x239   : > { %v2842_v8 = vpop.f32.mrb[25].mxu1  ;;  %v963_v47 = vadd.f32 %v2840_v7, %v2863_v18 }
 0x23a   : > { %v958_v58 = vadd.f32 %v2863_v18, %v2842_v8  ;;  %v1318_v8 = vld [vmem:[%s3142_s8] sm:$0x1] }
 0x23b   : > { %v1653_v7 = vmul.f32 -1.442695, %v963_v47 }
 0x23c   : > { %v2844_v52 = vpop.f32.mrb[26].mxu1 }
 0x23d   : > { %v2846_v10 = vpop.f32.mrb[27].mxu1  ;;  %v973_v6 = vadd.f32 %v2844_v52, %v2863_v18 }
 0x23e   : > { %v968_v61 = vadd.f32 %v2863_v18, %v2846_v10 }
 0x240   : > { %v2848_v11 = vpop.f32.mrb[28].mxu1 }
 0x241   : > { %v2850_v12 = vpop.f32.mrb[29].mxu1  ;;  %v983_v52 = vadd.f32 %v2848_v11, %v2863_v18 }
 0x244   : > { %v2852_v9 = vpop.f32.mrb[30].mxu1 }
 0x245   : > { %v2854_v13 = vpop.f32.mrb[31].mxu1  ;;  %v993_v10 = vadd.f32 %v2852_v9, %v2863_v18 }
 0x246   : > { %v988_v11 = vadd.f32 %v2863_v18, %v2854_v13 }
 0x248   : > { %v1309_v15 = vpop.f32.mrb[32].mxu1 }
 0x249   : > { %v1310_v16 = vadd.f32 %v1309_v15, %v1242_v14  ;;  %v1945_v17 = vpop.f32.mrb[33].mxu1  ;;  %v1097_v14 = vadd.f32 1.0, %v2089_v49  ;;  %v2093_v15 = vpop.eup %2092 }
 0x24a   : > { %v2095_v17 = vpop.eup %2094  ;;  %v1099_v22 = vadd.f32 1.0, %v2093_v15  ;;  %v1652_v15 = vmul.f32 -1.442695, %v958_v58 }
 0x24b   : > { %v1313_v53 = vmax.f32 %v1310_v16, 0.0  ;;  %v1643_v16 = vmul.f32 -1.442695, %v913_v62  ;;  %v2097_v20 = vpop.eup %2096  ;;  %2116 = vrcp.f32 %v1097_v14  ;;  %v1098_v24 = vadd.f32 1.0, %v2095_v17 }
 0x24c   : > { %v2099_v63 = vpop.eup %2098  ;;  %v1101_v25 = vadd.f32 1.0, %v2097_v20  ;;  %v1651_v62 = vmul.f32 -1.442695, %v953_v4  ;;  %v1655_v17 = vmul.f32 -1.442695, %v973_v6 }
 0x24d   : > { %1955 = vmatmul.mubr.msk.f32.vlgmr.msra.gmra.mrb[34].mxu1 %vm674_vm0, %v1313_v53  ;;  %v1642_v53 = vmul.f32 -1.442695, %v908_v60  ;;  %v2101_v23 = vpop.eup %2100  ;;  %2118 = vpow2.f32 %v1643_v16  ;;  %v1100_v54 = vadd.f32 1.0, %v2099_v63  ;;  %v1650_v60 = vmul.f32 -1.442695, %v948_v5 }
 0x24e   : > { %v2887_v27 = vpop.eup %2102  ;;  %v1103_v29 = vadd.f32 1.0, %v2101_v23 }
 0x24f   : > { %2120 = vpow2.f32 %v1642_v53  ;;  %v2105_v28 = vpop.eup %2104  ;;  %v978_v53 = vadd.f32 %v2863_v18, %v2850_v12 }
 0x250   : > { %2122 = vrcp.f32 %v1096_v21  ;;  %v2107_v30 = vpop.eup %2106  ;;  %v1102_v1 = vadd.f32 1.0, %v2105_v28 }
 0x251   : > { %2124 = vrcp.f32 %v1099_v22  ;;  %v2891_v33 = vpop.eup %2108  ;;  %v1105_v55 = vadd.f32 1.0, %v2107_v30  ;;  %v1658_v30 = vmul.f32 -1.442695, %v988_v11 }
 0x252   : > { %2126 = vrcp.f32 %v1098_v24  ;;  %v2111_v34 = vpop.eup %2110  ;;  %v1654_v24 = vmul.f32 -1.442695, %v968_v61 }
 0x253   : > { %2128 = vrcp.f32 %v1101_v25  ;;  %v2895_v36 = vpop.eup %2112  ;;  %v1104_v40 = vadd.f32 1.0, %v2111_v34  ;;  %v1657_v25 = vmul.f32 -1.442695, %v983_v52 }
 0x254   : > { %2130 = vrcp.f32 %v1100_v54  ;;  %v2899_v19 = vpop.eup %2114  ;;  %v1656_v54 = vmul.f32 -1.442695, %v978_v53 }
 0x255   : > { %2132 = vrcp.f32 %v1103_v29  ;;  %v2903_v39 = vpop.eup %2116  ;;  %v1659_v29 = vmul.f32 -1.442695, %v993_v10 }
 0x256   : > { %2134 = vpow2.f32 %v1645_v31 }
 0x257   : > { %2136 = vpow2.f32 %v1644_v0  ;;  %v2119_v41 = vpop.eup %2118 }
 0x258   : > { %2138 = vrcp.f32 %v1102_v1  ;;  %v1107_v56 = vadd.f32 1.0, %v2119_v41 }
 0x259   : > { %v2121_v42 = vpop.eup %2120  ;;  %2140 = vrcp.f32 %v1105_v55 }
 0x25a   : > { %v2907_v44 = vpop.eup %2122  ;;  %2142 = vpow2.f32 %v1647_v2  ;;  %v1106_v49 = vadd.f32 1.0, %v2121_v42 }
 0x25b   : > { %v2911_v46 = vpop.eup %2124  ;;  %2144 = vrcp.f32 %v1104_v40 }
 0x25c   : > { %v2915_v48 = vpop.eup %2126  ;;  %2146 = vpow2.f32 %v1646_v3 }
 0x25d   : > { %v2919_v50 = vpop.eup %2128  ;;  %2148 = vpow2.f32 %v1649_v43 }
 0x25e   : > { %v2923_v59 = vpop.eup %2130  ;;  %2150 = vpow2.f32 %v1648_v45 }
 0x25f   : > { %v2925_v57 = vpop.eup %2132  ;;  %2152 = vrcp.f32 %v1107_v56 }
 0x260   : > { %v2135_v14 = vpop.eup %2134  ;;  %2154 = vrcp.f32 %v1106_v49  ;;  %v1398_v49 = vlaneseq }
 0x261   : > { %v2137_v16 = vpop.eup %2136  ;;  %2156 = vpow2.f32 %v1651_v62  ;;  %v1109_v32 = vadd.f32 1.0, %v2135_v14 }
 0x262   : > { %v2936_v21 = vpop.eup %2138  ;;  %2158 = vpow2.f32 %v1650_v60  ;;  %v1108_v13 = vadd.f32 1.0, %v2137_v16 }
 0x263   : > { %v2940_v23 = vpop.eup %2140  ;;  %2160 = vpow2.f32 %v1653_v7 }
 0x264   : > { %v2143_v51 = vpop.eup %2142  ;;  %2162 = vpow2.f32 %v1652_v15  ;;  %v1399_v15 = vshrl.u32 %v1398_v49, 7  ;;  %v2213_v49 = vld [vmem:[%s2511_s19 + $0x8] sm:$0xff] }
 0x265   : > { %v2944_v26 = vpop.eup %2144  ;;  %2164 = vpow2.f32 %v1655_v17  ;;  %v1111_v34 = vadd.f32 1.0, %v2143_v51 }
 0x266   : > { %v2147_v28 = vpop.eup %2146 }
 0x267   : > { %v2149_v9 = vpop.eup %2148  ;;  %v1110_v35 = vadd.f32 1.0, %v2147_v28 }
 0x268   : > { %v2151_v31 = vpop.eup %2150  ;;  %v1113_v37 = vadd.f32 1.0, %v2149_v9 }
 0x269   : > { %v2946_v0 = vpop.eup %2152  ;;  %v1112_v38 = vadd.f32 1.0, %v2151_v31 }
 0x26a   : > { %v2948_v18 = vpop.eup %2154 }
 0x26b   : > { %v2157_v1 = vpop.eup %2156 }
 0x26c   : > { %v2159_v55 = vpop.eup %2158  ;;  %v1115_v41 = vadd.f32 1.0, %v2157_v1 }
 0x26d   : > { %v2161_v2 = vpop.eup %2160  ;;  %v1114_v43 = vadd.f32 1.0, %v2159_v55 }
 0x26e   : > { %v2163_v40 = vpop.eup %2162  ;;  %v1117_v45 = vadd.f32 1.0, %v2161_v2 }
 0x26f   : > { %v2165_v3 = vpop.eup %2164  ;;  %v1116_v47 = vadd.f32 1.0, %v2163_v40 }
 0x270   : > { %v1119_v62 = vadd.f32 1.0, %v2165_v3 }
 0x320   : > { %v1388_v20 = vpop.f32.mrb[34].mxu1 }
 0x321   : > { %v1389_v63 = vadd.f32 %v1388_v20, %v1318_v8  ;;  %v1956_v22 = vpop.f32.mrb[35].mxu1 }
 0x323   : > { %v1661_v12 = vmul.f32 -1.442695, %v1389_v63  ;;  %v1400_v63 = vsub.s32 0, %v1399_v15 }
 0x325   : > { %2166 = vpow2.f32 %v1661_v12 }
 0x326   : > { %2168 = vpow2.f32 %v1654_v24 }
 0x327   : > { %2170 = vpow2.f32 %v1657_v25 }
 0x328   : > { %2172 = vpow2.f32 %v1656_v54 }
 0x329   : > { %2174 = vpow2.f32 %v1659_v29 }
 0x32a   : > { %2176 = vpow2.f32 %v1658_v30 }
 0x32b   : > { %2178 = vrcp.f32 %v1109_v32 }
 0x32c   : > { %2180 = vrcp.f32 %v1108_v13 }
 0x32d   : > { %2182 = vrcp.f32 %v1111_v34 }
 0x32e   : > { %2184 = vrcp.f32 %v1110_v35 }
 0x32f   : > { %v2167_v42 = vpop.eup %2166  ;;  %2186 = vrcp.f32 %v1113_v37 }
 0x330   : > { %v2169_v4 = vpop.eup %2168  ;;  %2188 = vrcp.f32 %v1112_v38  ;;  %v1395_v5 = vadd.f32 1.0, %v2167_v42 }
 0x331   : > { %v2171_v56 = vpop.eup %2170  ;;  %2190 = vrcp.f32 %v1115_v41  ;;  %v1118_v60 = vadd.f32 1.0, %v2169_v4 }
 0x332   : > { %v2173_v58 = vpop.eup %2172  ;;  %2192 = vrcp.f32 %v1395_v5  ;;  %v1121_v61 = vadd.f32 1.0, %v2171_v56  ;;  %v2212_v56 = vld [vmem:[%s2511_s19] sm:$0xff] }
 0x333   : > { %v2175_v6 = vpop.eup %2174  ;;  %2194 = vrcp.f32 %v1114_v43  ;;  %v1120_v14 = vadd.f32 1.0, %v2173_v58 }
 0x334   : > { %v2177_v7 = vpop.eup %2176  ;;  %2196 = vrcp.f32 %v1117_v45  ;;  %v1123_v16 = vadd.f32 1.0, %v2175_v6 }
 0x335   : > { %v2179_v8 = vpop.eup %2178  ;;  %2198 = vrcp.f32 %v1116_v47  ;;  %v1122_v53 = vadd.f32 1.0, %v2177_v7 }
 0x336   : > { %v2181_v52 = vpop.eup %2180  ;;  %2200 = vrcp.f32 %v1119_v62  ;;  %v2214_v62 = vld [vmem:[%s2511_s19 + $0x10] sm:$0xff] }
 0x337   : > { %v2183_v17 = vpop.eup %2182  ;;  %2202 = vrcp.f32 %v1118_v60  ;;  %v2215_v60 = vld [vmem:[%s2511_s19 + $0x18] sm:$0xff] }
 0x338   : > { %v2185_v20 = vpop.eup %2184  ;;  %2204 = vrcp.f32 %v1121_v61  ;;  %v2216_v61 = vld [vmem:[%s2511_s19 + $0x20] sm:$0xff] }
 0x339   : > { %v2187_v10 = vpop.eup %2186  ;;  %2206 = vrcp.f32 %v1120_v14  ;;  %v2217_v14 = vld [vmem:[%s2511_s19 + $0x28] sm:$0xff] }
 0x33a   : > { %v2189_v22 = vpop.eup %2188  ;;  %2208 = vrcp.f32 %v1123_v16 }
 0x33b   : > { %v2191_v24 = vpop.eup %2190  ;;  %2210 = vrcp.f32 %v1122_v53 }
 0x33c   : > { %v2193_v11 = vpop.eup %2192 }
 0x33d   : > { %v2195_v51 = vpop.eup %2194  ;;  %v1401_v25 = vrot.slane %v2193_v11, %v1400_v63  ;;  %v2221_v63 = vld [vmem:[%s2511_s19 + $0x48] sm:$0xff] }
 0x33e   : > { %v2197_v12 = vpop.eup %2196 }
 0x33f   : > { %v2199_v54 = vpop.eup %2198  ;;  %v1402_v28 = vadd.f32 %v2891_v33, %v1401_v25  ;;  %v1403_v29 = vadd.f32 %v2887_v27, %v1401_v25  ;;  %v1404_v9 = vadd.f32 %v2899_v19, %v1401_v25  ;;  %v1405_v30 = vadd.f32 %v2895_v36, %v1401_v25 }
 0x340   : > { %v2201_v31 = vpop.eup %2200  ;;  %v1406_v32 = vadd.f32 %v2907_v44, %v1401_v25  ;;  %v1407_v13 = vadd.f32 %v2903_v39, %v1401_v25  ;;  %v1408_v34 = vadd.f32 %v2915_v48, %v1401_v25  ;;  %v1409_v1 = vadd.f32 %v2911_v46, %v1401_v25 }
 0x341   : > { %v2203_v35 = vpop.eup %2202  ;;  %v1410_v55 = vadd.f32 %v2923_v59, %v1401_v25  ;;  %v1411_v33 = vadd.f32 %v2919_v50, %v1401_v25  ;;  %v1412_v27 = vadd.f32 %v2936_v21, %v1401_v25  ;;  %v1413_v19 = vadd.f32 %v2925_v57, %v1401_v25 }
 0x342   : > { %v2205_v37 = vpop.eup %2204  ;;  %v1414_v36 = vadd.f32 %v2944_v26, %v1401_v25  ;;  %v1415_v44 = vadd.f32 %v2940_v23, %v1401_v25  ;;  %v1416_v39 = vadd.f32 %v2948_v18, %v1401_v25  ;;  %v1417_v48 = vadd.f32 %v2946_v0, %v1401_v25 }
 0x343   : > { %v2207_v2 = vpop.eup %2206  ;;  %v1418_v46 = vadd.f32 %v2181_v52, %v1401_v25  ;;  %v2966_v38 = vadd.f32 %v2179_v8, %v1401_v25  ;;  %v2968_v59 = vadd.f32 %v2185_v20, %v1401_v25  ;;  %v2970_v50 = vadd.f32 %v2183_v17, %v1401_v25  ;;  %v2218_v52 = vld [vmem:[%s2511_s19 + $0x30] sm:$0xff]  ;;  %v2219_v17 = vld [vmem:[%s2511_s19 + $0x38] sm:$0xff]  ;;  %v2220_v20 = vld [vmem:[%s2511_s19 + $0x40] sm:$0xff] }
 0x344   : > { %v2209_v21 = vpop.eup %2208  ;;  %v2972_v57 = vadd.f32 %v2189_v22, %v1401_v25  ;;  %v2974_v26 = vadd.f32 %v2187_v10, %v1401_v25  ;;  %v2976_v23 = vadd.f32 %v2195_v51, %v1401_v25  ;;  %v2978_v18 = vadd.f32 %v2191_v24, %v1401_v25  ;;  %v2222_v24 = vld [vmem:[%s2511_s19 + $0x50] sm:$0xff]  ;;  %v2223_v51 = vld [vmem:[%s2511_s19 + $0x58] sm:$0xff] }
 0x345   : > { %v2211_v0 = vpop.eup %2210  ;;  %v2980_v40 = vadd.f32 %v2199_v54, %v1401_v25  ;;  %v2982_v41 = vadd.f32 %v2197_v12, %v1401_v25  ;;  %v2984_v3 = vadd.f32 %v2203_v35, %v1401_v25  ;;  %v2986_v42 = vadd.f32 %v2201_v31, %v1401_v25  ;;  %v2224_v12 = vld [vmem:[%s2511_s19 + $0x60] sm:$0xff]  ;;  %v2227_v31 = vld [vmem:[%s2511_s19 + $0x78] sm:$0xff] }
 0x346   : > { %v2988_v43 = vadd.f32 %v2207_v2, %v1401_v25  ;;  %v2990_v4 = vadd.f32 %v2205_v37, %v1401_v25  ;;  %v2992_v45 = vadd.f32 %v2211_v0, %v1401_v25  ;;  %v2994_v5 = vadd.f32 %v2209_v21, %v1401_v25  ;;  %v2232_v37 = vld [vmem:[%s2511_s19 + $0xa0] sm:$0xff]  ;;  %v2237_v21 = vld [vmem:[%s2511_s19 + $0xc8] sm:$0xff] }
 0x347   : > { %v1434_v47 = vadd.f32 %v2212_v56, %v1402_v28  ;;  %v1435_v58 = vadd.f32 %v2213_v49, %v1403_v29  ;;  %v1436_v6 = vadd.f32 %v2214_v62, %v1404_v9  ;;  %v1437_v7 = vadd.f32 %v2215_v60, %v1405_v30  ;;  %v2225_v28 = vld [vmem:[%s2511_s19 + $0x68] sm:$0xff]  ;;  %v2226_v9 = vld [vmem:[%s2511_s19 + $0x70] sm:$0xff]  ;;  %v2243_v49 = vld [vmem:[%s2511_s19 + $0xf8] sm:$0xff] }
 0x348   : > { %v1438_v8 = vadd.f32 %v2216_v61, %v1406_v32  ;;  %v1439_v15 = vadd.f32 %v2217_v14, %v1407_v13  ;;  %v1440_v16 = vadd.f32 %v2218_v52, %v1408_v34  ;;  %v1441_v53 = vadd.f32 %v2219_v17, %v1409_v1  ;;  %v2228_v13 = vld [vmem:[%s2511_s19 + $0x80] sm:$0xff]  ;;  %v2229_v1 = vld [vmem:[%s2511_s19 + $0x88] sm:$0xff]  ;;  %v2242_v56 = vld [vmem:[%s2511_s19 + $0xf0] sm:$0xff] }
 0x349   : > { %v1442_v10 = vadd.f32 %v2220_v20, %v1410_v55  ;;  %v1443_v22 = vadd.f32 %v2221_v63, %v1411_v33  ;;  %v1444_v11 = vadd.f32 %v2222_v24, %v1412_v27  ;;  %v1445_v25 = vadd.f32 %v2223_v51, %v1413_v19  ;;  %1466 = vst [vmem:[%s3010_s24] sm:$0xff] %v1434_v47  ;;  %v2230_v55 = vld [vmem:[%s2511_s19 + $0x90] sm:$0xff]  ;;  %v2231_v27 = vld [vmem:[%s2511_s19 + $0x98] sm:$0xff] }
 0x34a   : > { %1467 = vst [vmem:[%s3010_s24 + $0x8] sm:$0xff] %v1435_v58  ;;  %1468 = vst [vmem:[%s3010_s24 + $0x10] sm:$0xff] %v1436_v6  ;;  %v1446_v54 = vadd.f32 %v2224_v12, %v1414_v36  ;;  %v1447_v29 = vadd.f32 %v2225_v28, %v1415_v44  ;;  %v1448_v30 = vadd.f32 %v2226_v9, %v1416_v39  ;;  %v2233_v44 = vld [vmem:[%s2511_s19 + $0xa8] sm:$0xff] }
 0x34b   : > { %1469 = vst [vmem:[%s3010_s24 + $0x18] sm:$0xff] %v1437_v7  ;;  %v1449_v32 = vadd.f32 %v2227_v31, %v1417_v48  ;;  %1470 = vst [vmem:[%s3010_s24 + $0x20] sm:$0xff] %v1438_v8  ;;  %v1450_v34 = vadd.f32 %v2228_v13, %v1418_v46  ;;  %v1451_v35 = vadd.f32 %v2229_v1, %v2966_v38  ;;  %v2234_v48 = vld [vmem:[%s2511_s19 + $0xb0] sm:$0xff]  ;;  %v2235_v46 = vld [vmem:[%s2511_s19 + $0xb8] sm:$0xff] }
 0x34c   : > { %1471 = vst [vmem:[%s3010_s24 + $0x28] sm:$0xff] %v1439_v15  ;;  %1472 = vst [vmem:[%s3010_s24 + $0x30] sm:$0xff] %v1440_v16  ;;  %v1452_v33 = vadd.f32 %v2230_v55, %v2968_v59  ;;  %v1453_v19 = vadd.f32 %v2231_v27, %v2970_v50  ;;  %v1454_v36 = vadd.f32 %v2232_v37, %v2972_v57  ;;  %v2236_v59 = vld [vmem:[%s2511_s19 + $0xc0] sm:$0xff] }
 0x34d   : > { %1473 = vst [vmem:[%s3010_s24 + $0x38] sm:$0xff] %v1441_v53  ;;  %1474 = vst [vmem:[%s3010_s24 + $0x40] sm:$0xff] %v1442_v10  ;;  %v1455_v39 = vadd.f32 %v2233_v44, %v2974_v26  ;;  %v1456_v2 = vadd.f32 %v2234_v48, %v2976_v23  ;;  %v1457_v38 = vadd.f32 %v2235_v46, %v2978_v18  ;;  %v2238_v26 = vld [vmem:[%s2511_s19 + $0xd0] sm:$0xff]  ;;  %v2239_v18 = vld [vmem:[%s2511_s19 + $0xd8] sm:$0xff] }
 0x34e   : > { %1475 = vst [vmem:[%s3010_s24 + $0x48] sm:$0xff] %v1443_v22  ;;  %1476 = vst [vmem:[%s3010_s24 + $0x50] sm:$0xff] %v1444_v11  ;;  %v1458_v50 = vadd.f32 %v2236_v59, %v2980_v40  ;;  %v1459_v57 = vadd.f32 %v2237_v21, %v2982_v41  ;;  %v1460_v23 = vadd.f32 %v2238_v26, %v2984_v3  ;;  %v2240_v40 = vld [vmem:[%s2511_s19 + $0xe0] sm:$0xff]  ;;  %v2241_v3 = vld [vmem:[%s2511_s19 + $0xe8] sm:$0xff]  ;;  %s2348_s19 = smov [#allocation5]  }
 0x34f   : > { %1477 = vst [vmem:[%s3010_s24 + $0x58] sm:$0xff] %v1445_v25  ;;  %1478 = vst [vmem:[%s3010_s24 + $0x60] sm:$0xff] %v1446_v54  ;;  %v1461_v0 = vadd.f32 %v2239_v18, %v2986_v42  ;;  %v1462_v41 = vadd.f32 %v2240_v40, %v2988_v43  ;;  %v1463_v42 = vadd.f32 %v2241_v3, %v2990_v4  ;;  %s2278_s26 = sshll.u32 %s2348_s19, 4  ;;  %s2279_s26 = int_to_ptr.vmem [resolvable:$false] %s2278_s26 }
 0x350   : > { %1479 = vst [vmem:[%s3010_s24 + $0x68] sm:$0xff] %v1447_v29  ;;  %1480 = vst [vmem:[%s3010_s24 + $0x70] sm:$0xff] %v1448_v30  ;;  %v1464_v47 = vadd.f32 %v2242_v56, %v2992_v45  ;;  %v1465_v58 = vadd.f32 %v2243_v49, %v2994_v5  ;;  %s2280_s25 = scalar_lea.vmem %s2279_s26, 8192  ;;  %p2281_p8 = scmp.lt.s32.totalorder %s3070_s14, %s2279_s26 }
 0x351   : > { %1481 = vst [vmem:[%s3010_s24 + $0x78] sm:$0xff] %v1449_v32  ;;  %1482 = vst [vmem:[%s3010_s24 + $0x80] sm:$0xff] %v1450_v34  ;;  %p2282_p10 = scmp.lt.s32.totalorder %s2280_s25, %s2274_s27 }
 0x352   : > { %1483 = vst [vmem:[%s3010_s24 + $0x88] sm:$0xff] %v1451_v35  ;;  %1484 = vst [vmem:[%s3010_s24 + $0x90] sm:$0xff] %v1452_v33 }
 0x353   : > { %1485 = vst [vmem:[%s3010_s24 + $0x98] sm:$0xff] %v1453_v19  ;;  %1486 = vst [vmem:[%s3010_s24 + $0xa0] sm:$0xff] %v1454_v36  ;;  %p2283_p0 = por %p2282_p10, %p2281_p8 }
 0x354   : > { %1487 = vst [vmem:[%s3010_s24 + $0xa8] sm:$0xff] %v1455_v39  ;;  %1488 = vst [vmem:[%s3010_s24 + $0xb0] sm:$0xff] %v1456_v2 }
 0x355   : > { %1489 = vst [vmem:[%s3010_s24 + $0xb8] sm:$0xff] %v1457_v38  ;;  %1490 = vst [vmem:[%s3010_s24 + $0xc0] sm:$0xff] %v1458_v50  ;;  %p2284_p2 = pnand %p2283_p0, %p2277_p13 }
 0x356   : > { %1491 = vst [vmem:[%s3010_s24 + $0xc8] sm:$0xff] %v1459_v57  ;;  %1492 = vst [vmem:[%s3010_s24 + $0xd0] sm:$0xff] %v1460_v23 }
 0x357   : > { %1493 = vst [vmem:[%s3010_s24 + $0xd8] sm:$0xff] %v1461_v0  ;;  %1494 = vst [vmem:[%s3010_s24 + $0xe0] sm:$0xff] %v1462_v41 }
 0x358   : > { %1495 = vst [vmem:[%s3010_s24 + $0xe8] sm:$0xff] %v1463_v42  ;;  %1496 = vst [vmem:[%s3010_s24 + $0xf0] sm:$0xff] %v1464_v47 }
 0x359   : > { %1497 = vst [vmem:[%s3010_s24 + $0xf8] sm:$0xff] %v1465_v58 }
 0x35a   : > { %2287 = shalt.err (!%p2284_p2)
}
 0x35b   : > { %s2288_s20 = scalar_lea.hbm %s3066_s23, 4096  ;;  %s2292_s16 = scalar_lea.hbm %s3143_s9, 8192 }
 0x35c   : > { %p2289_p4 = scmp.ne.s32.totalorder %s3066_s23, %s2288_s20  ;;  %p2293_p9 = scmp.lt.u32.totalorder %s3066_s23, %s3143_s9 }
 0x35d   : > { %p2294_p1 = scmp.lt.u32.totalorder %s2292_s16, %s2288_s20  ;;  %p2296_p6 = scmp.lt.u32.totalorder %s2288_s20, %s3066_s23 }
 0x35e   : > { %p2290_p5 = pnand %p2289_p4, %p3152_p11 }
 0x35f   : > { %p2295_p3 = por %p2294_p1, %p2293_p9 }
 0x360   : > { %p2291_p7 = pneg %p2290_p5 }
 0x361   : > { %p2297_p12 = por %p2296_p6, %p2295_p3 }
 0x363   : > { %p2298_p13 = pnand %p2297_p12, %p2291_p7 }
 0x365   : > { %2301 = shalt.err (!%p2298_p13)
}
 0x366   : > { %s2349_s27 = smov 128   ;;  %s2350_s26 = smov 8  }
 0x367   : > { %2029 = dma.vmem_to_hbm [thread:$0]  (%p3152_p11), %s3070_s14, 4096, %s3066_s23, %s1499_s13, %s2349_s27, %s2349_s27, %s2350_s26  }
 0x368 PF: > { %s1527_s25 = sand.u32 1, %s2328_s30   ;;  %p3153_p8 = scmp.ne.s32.totalorder %s3149_s22, 0 }
 0x369   : > { %p3154_p10 = scmp.ge.s32.totalorder %s2340_s12, 2  ;;  %s1528_s20 = scalar_lea.sflag [#allocation4], %s1527_s25 }
 0x36b   : > { %p2036_p0 = pnand %p3154_p10, %p3153_p8 }
 0x36d   : > { %2323 = dma.done.wait (!%p2036_p0), %s1528_s20, 4096  }
 0x36e   : > { %2325 = vsyncadd (!%p2036_p0), %s1528_s20, 4294963200  ;;  %p22_p2 = scmp.ge.s32.totalorder %s2426_s15, 4   ;;  %s3155_s30 = smov %s2332_s10 }
 0x36f   : > { %s3156_s10 = smov %s2336_s11  ;;  %s3157_s11 = smov %s2438_s18 }
 0x370   : > { %s3158_s12 = smov %s2426_s15  ;;  %24 = sbr.rel (!%p22_p2) target bundleno = 5 (0x5), region = 101 }
 0x377   :  { %1533 = vsyncpa [#allocation3], 1 }
 0x378   :  { %1535 = vsyncpa [#allocation3 + $0x1], 1 }
 0x379   :  { %1536 = vsyncpa [#allocation4], 1 }
 0x37a   :  { %1538 = vsyncpa [#allocation4 + $0x1], 1 }

</bundles_post_ra>
